<compile_context>
chip_gen: v6e
topology: v6e:2x2x1
jax: 0.10.0
libtpu: 0.0.40
codegen_flags: <defaults>
</compile_context>

<pallas_src>
import jax
import jax.numpy as jnp
from jax.experimental import pallas as pl
from jax.experimental.pallas import tpu as pltpu


LANE = 128
_VMEM_LIMIT = 32 * 1024 * 1024   # safe scoped-VMEM request on v5e/v6e/v7x
_VMEM_BUDGET = 24 * 1024 * 1024  # what the tile chooser is allowed to plan for


def _round_up(x, m):
    return ((x + m - 1) // m) * m


def _choose_row_tile(n, in_feats, n_hidden, c_pad, budget=_VMEM_BUDGET):
    """Largest row tile (multiple of 8, <=512) whose residents + double-buffered
    row tiles fit the VMEM budget for BOTH pallas calls."""
    f32 = 4
    resident = max(
        # layer-0 call residents: X, W0, b0
        (n * in_feats + in_feats * n_hidden + n_hidden) * f32,
        # layer-1+proto call residents: h1, W1, b1, protoH^T, protoE^T, ||p||^2
        (n * n_hidden + n_hidden * n_hidden + n_hidden
         + 2 * n_hidden * c_pad + c_pad) * f32,
    )
    n8 = _round_up(n, 8)
    for cand in (512, 256, 128, 64, 32, 16, 8):
        tm = min(cand, n8)
        # double-buffered per-tile traffic: Ahat row tile + emb tile + output tile
        per_tile = 2 * tm * (n + 2 * n_hidden + c_pad) * f32
        if resident + per_tile <= budget:
            return tm
    return 8


# ---------------- kernel 1: GraphConv layer 0 (row-tiled) ----------------
def gcn_layer0_kernel(ahat_ref, x_ref, w0_ref, b0_ref, h_ref):
    # xw = X @ W0 recomputed per row tile (extra cost is only the F/TM fraction
    # of the tile's main matmul; keeps the row grid embarrassingly parallel so
    # the "parallel" axis can be megacore-sharded, and keeps X -- smaller than
    # XW when F < H -- as the resident array).
    xw = jnp.dot(x_ref[...], w0_ref[...], preferred_element_type=jnp.float32)
    h = jnp.dot(ahat_ref[...], xw, preferred_element_type=jnp.float32) + b0_ref[...]
    h_ref[...] = jnp.maximum(h, 0.0)


# -------- kernel 2: GraphConv layer 1 fused with Prototype head (row-tiled) --------
def gcn_layer1_proto_kernel(ahat_ref, h1_ref, w1_ref, b1_ref, emb_ref,
                            ph_ref, pe_ref, pn_ref, out_ref):
    hw = jnp.dot(h1_ref[...], w1_ref[...], preferred_element_type=jnp.float32)
    h2 = jnp.dot(ahat_ref[...], hw, preferred_element_type=jnp.float32) + b1_ref[...]

    emb = emb_ref[...]
    # Prototype classifier on concat([h2, emb], axis=1) WITHOUT materializing the
    # concat: split the contraction over the two halves.  Proto halves arrive
    # pre-transposed as (H, Cpad), so no transpose / relayout in-kernel.
    cross = (jnp.dot(h2, ph_ref[...], preferred_element_type=jnp.float32)
             + jnp.dot(emb, pe_ref[...], preferred_element_type=jnp.float32))
    # cross-lane reduce goes to the XLU (separate bundle slot from the VPU adds)
    hn = (jnp.sum(h2 * h2, axis=1, keepdims=True)
          + jnp.sum(emb * emb, axis=1, keepdims=True))
    # pn = ||proto_c||^2 is constant wrt node features -> hoisted to the wrapper.
    # out[n, c] = -||concat(h2, emb)_n - proto_c||^2 = 2*cross - hn - pn
    out_ref[...] = 2.0 * cross - hn - pn_ref[...]


@jax.jit
def gcn_proto_forward(ahat, x, w0, b0, w1, b1, emb, proto):
    n, in_feats = x.shape
    n_hidden = w0.shape[1]
    n_classes = proto.shape[0]
    c_pad = _round_up(n_classes, LANE)   # lane-dense output store
    tm = _choose_row_tile(n, in_feats, n_hidden, c_pad)
    grid = (pl.cdiv(n, tm),)

    cparams = pltpu.CompilerParams(
        dimension_semantics=("parallel",),
        vmem_limit_bytes=_VMEM_LIMIT,
    )

    full = lambda shape: pl.BlockSpec(shape, lambda i: (0, 0))
    rowtile = lambda cols: pl.BlockSpec((tm, cols), lambda i: (i, 0))

    # --- GraphConv layer 0: h1 = relu(Ahat @ (X @ W0) + b0) ---
    h1 = pl.pallas_call(
        gcn_layer0_kernel,
        out_shape=jax.ShapeDtypeStruct((n, n_hidden), jnp.float32),
        grid=grid,
        in_specs=[rowtile(n),                  # Ahat row tile
                  full((n, in_feats)),         # X         (resident)
                  full((in_feats, n_hidden)),  # W0        (resident)
                  full((1, n_hidden))],        # b0        (resident)
        out_specs=rowtile(n_hidden),
        compiler_params=cparams,
    )(ahat, x, w0, b0)

    # --- host-side layout plumbing for the prototype head ---
    # TODO(synk): Prototype class is undefined in the source file; standard
    # prototype classifier out[n, c] = -||h_n - proto_c||^2 is assumed.
    ph = jnp.zeros((n_hidden, c_pad), jnp.float32).at[:, :n_classes].set(
        proto[:, :n_hidden].T)
    pe = jnp.zeros((n_hidden, c_pad), jnp.float32).at[:, :n_classes].set(
        proto[:, n_hidden:].T)
    pn = jnp.zeros((1, c_pad), jnp.float32).at[0, :n_classes].set(
        jnp.sum(proto * proto, axis=1))

    # --- GraphConv layer 1 + prototype head, fused, row-tiled ---
    out_pad = pl.pallas_call(
        gcn_layer1_proto_kernel,
        out_shape=jax.ShapeDtypeStruct((n, c_pad), jnp.float32),
        grid=grid,
        in_specs=[rowtile(n),                    # Ahat row tile
                  full((n, n_hidden)),           # h1        (resident)
                  full((n_hidden, n_hidden)),    # W1        (resident)
                  full((1, n_hidden)),           # b1        (resident)
                  rowtile(n_hidden),             # emb row tile
                  full((n_hidden, c_pad)),       # proto half 0^T (resident)
                  full((n_hidden, c_pad)),       # proto half 1^T (resident)
                  full((1, c_pad))],             # ||proto||^2    (resident)
        out_specs=pl.BlockSpec((tm, c_pad), lambda i: (i, 0)),
        compiler_params=cparams,
    )(ahat, h1, w1, b1, emb, ph, pe, pn)

    return out_pad[:, :n_classes]


def _glorot(key, shape):
    fan_in, fan_out = shape
    limit = jnp.sqrt(6.0 / (fan_in + fan_out))
    return jax.random.uniform(key, shape, jnp.float32, -limit, limit)


def build_normalized_adjacency(key, n):
    # random symmetric graph + self loops, DGL 'both' normalization
    a = (jax.random.uniform(key, (n, n)) < 0.1).astype(jnp.float32)
    a = jnp.maximum(a, a.T)
    a = jnp.maximum(a, jnp.eye(n, dtype=jnp.float32))   # self loops
    deg = jnp.sum(a, axis=1)
    dinv_sqrt = 1.0 / jnp.sqrt(jnp.maximum(deg, 1.0))
    return a * dinv_sqrt[:, None] * dinv_sqrt[None, :]


if __name__ == "__main__":
    N, in_feats, n_hidden, n_classes = 64, 16, 32, 4

    key = jax.random.PRNGKey(0)
    k_adj, k_x, k_w0, k_w1, k_emb, k_proto = jax.random.split(key, 6)

    ahat = build_normalized_adjacency(k_adj, N)
    x = jax.random.normal(k_x, (N, in_feats), jnp.float32)
    emb = jax.random.normal(k_emb, (N, n_hidden), jnp.float32)

    # GraphConv params (glorot weight, zero bias), Prototype params
    w0 = _glorot(k_w0, (in_feats, n_hidden))
    b0 = jnp.zeros((1, n_hidden), jnp.float32)
    w1 = _glorot(k_w1, (n_hidden, n_hidden))
    b1 = jnp.zeros((1, n_hidden), jnp.float32)
    proto = jax.random.normal(k_proto, (n_classes, 2 * n_hidden), jnp.float32)

    out = gcn_proto_forward(ahat, x, w0, b0, w1, b1, emb, proto)
    jax.block_until_ready(out)

    # pure-JAX reference check
    h = jnp.maximum(ahat @ (x @ w0) + b0, 0.0)
    h = ahat @ (h @ w1) + b1
    hc = jnp.concatenate([h, emb], axis=1)
    ref = (2.0 * hc @ proto.T
           - jnp.sum(hc * hc, axis=1, keepdims=True)
           - jnp.sum(proto * proto, axis=1)[None, :])
    assert out.shape == (N, n_classes)
    assert jnp.allclose(out, ref, atol=1e-4, rtol=1e-4)

    print("KERNEL_OK")
</pallas_src>

<mosaic_0001>
module attributes {stable_mosaic.version = 11 : i64} {
  func.func @gcn_layer0_kernel(%arg0: i32, %arg1: memref<64x64xf32, #tpu.memory_space<vmem>>, %arg2: memref<64x16xf32, #tpu.memory_space<vmem>>, %arg3: memref<16x32xf32, #tpu.memory_space<vmem>>, %arg4: memref<1x32xf32, #tpu.memory_space<vmem>>, %arg5: memref<64x32xf32, #tpu.memory_space<vmem>>) attributes {dimension_semantics = [#tpu.dimension_semantics<parallel>], iteration_bounds = array<i64: 1>, scalar_prefetch = 0 : i64, scratch_operands = 0 : i64, tpu.core_type = #tpu.core_type<tc>, window_params = [{transform_indices = @transform_0, window_bounds = array<i64: 64, 64>}, {pipeline_mode = #tpu.pipeline_mode<synchronous>, transform_indices = @transform_1, window_bounds = array<i64: 64, 16>}, {pipeline_mode = #tpu.pipeline_mode<synchronous>, transform_indices = @transform_2, window_bounds = array<i64: 16, 32>}, {pipeline_mode = #tpu.pipeline_mode<synchronous>, transform_indices = @transform_3, window_bounds = array<i64: 1, 32>}, {transform_indices = @transform_4, window_bounds = array<i64: 64, 32>}]} {
    %c0 = arith.constant 0 : index
    %c0_0 = arith.constant 0 : index
    %0 = vector.load %arg2[%c0, %c0_0] : memref<64x16xf32, #tpu.memory_space<vmem>>, vector<64x16xf32>
    %c0_1 = arith.constant 0 : index
    %c0_2 = arith.constant 0 : index
    %1 = vector.load %arg3[%c0_1, %c0_2] : memref<16x32xf32, #tpu.memory_space<vmem>>, vector<16x32xf32>
    %cst = arith.constant dense<0.000000e+00> : vector<64x32xf32>
    %2 = tpu.matmul %0, %1, %cst {dimension_numbers = #tpu.dot_dimension_numbers<[1], [0], [0], [1], [0, 0, 1, 1], [], []>} : vector<64x16xf32>, vector<16x32xf32>, vector<64x32xf32> -> vector<64x32xf32>
    %c0_3 = arith.constant 0 : index
    %c0_4 = arith.constant 0 : index
    %3 = vector.load %arg1[%c0_3, %c0_4] : memref<64x64xf32, #tpu.memory_space<vmem>>, vector<64x64xf32>
    %cst_5 = arith.constant dense<0.000000e+00> : vector<64x32xf32>
    %4 = tpu.matmul %3, %2, %cst_5 {dimension_numbers = #tpu.dot_dimension_numbers<[1], [0], [0], [1], [0, 0, 1, 1], [], []>} : vector<64x64xf32>, vector<64x32xf32>, vector<64x32xf32> -> vector<64x32xf32>
    %c0_6 = arith.constant 0 : index
    %c0_7 = arith.constant 0 : index
    %5 = vector.load %arg4[%c0_6, %c0_7] : memref<1x32xf32, #tpu.memory_space<vmem>>, vector<1x32xf32>
    %6 = vector.broadcast %5 : vector<1x32xf32> to vector<64x32xf32>
    %7 = arith.addf %4, %6 : vector<64x32xf32>
    %cst_8 = arith.constant 0.000000e+00 : f32
    %8 = vector.broadcast %cst_8 : f32 to vector<64x32xf32>
    %9 = arith.maximumf %7, %8 : vector<64x32xf32>
    %c0_9 = arith.constant 0 : index
    %c0_10 = arith.constant 0 : index
    %10 = vector.load %arg5[%c0_9, %c0_10] : memref<64x32xf32, #tpu.memory_space<vmem>>, vector<64x32xf32>
    tpu.vector_store %arg5[%c0_9, %c0_10], %9 {strides = array<i32>} : memref<64x32xf32, #tpu.memory_space<vmem>>, vector<64x32xf32>,
    return
  }
  func.func @transform_0(%arg0: i32) -> (i32, i32) {
    %c0_i32 = arith.constant 0 : i32
    %c0_i32_0 = arith.constant 0 : i32
    return %arg0, %c0_i32 : i32, i32
  }
  func.func @transform_1(%arg0: i32) -> (i32, i32) {
    %c0_i32 = arith.constant 0 : i32
    %c0_i32_0 = arith.constant 0 : i32
    %c0_i32_1 = arith.constant 0 : i32
    return %c0_i32, %c0_i32_0 : i32, i32
  }
  func.func @transform_2(%arg0: i32) -> (i32, i32) {
    %c0_i32 = arith.constant 0 : i32
    %c0_i32_0 = arith.constant 0 : i32
    %c0_i32_1 = arith.constant 0 : i32
    return %c0_i32, %c0_i32_0 : i32, i32
  }
  func.func @transform_3(%arg0: i32) -> (i32, i32) {
    %c0_i32 = arith.constant 0 : i32
    %c0_i32_0 = arith.constant 0 : i32
    %c0_i32_1 = arith.constant 0 : i32
    return %c0_i32, %c0_i32_0 : i32, i32
  }
  func.func @transform_4(%arg0: i32) -> (i32, i32) {
    %c0_i32 = arith.constant 0 : i32
    %c0_i32_0 = arith.constant 0 : i32
    return %arg0, %c0_i32 : i32, i32
  }
}

module attributes {stable_mosaic.version = 11 : i64} {
  func.func @gcn_layer1_proto_kernel(%arg0: i32, %arg1: memref<64x64xf32, #tpu.memory_space<vmem>>, %arg2: memref<64x32xf32, #tpu.memory_space<vmem>>, %arg3: memref<32x32xf32, #tpu.memory_space<vmem>>, %arg4: memref<1x32xf32, #tpu.memory_space<vmem>>, %arg5: memref<64x32xf32, #tpu.memory_space<vmem>>, %arg6: memref<32x128xf32, #tpu.memory_space<vmem>>, %arg7: memref<32x128xf32, #tpu.memory_space<vmem>>, %arg8: memref<1x128xf32, #tpu.memory_space<vmem>>, %arg9: memref<64x128xf32, #tpu.memory_space<vmem>>) attributes {dimension_semantics = [#tpu.dimension_semantics<parallel>], iteration_bounds = array<i64: 1>, scalar_prefetch = 0 : i64, scratch_operands = 0 : i64, tpu.core_type = #tpu.core_type<tc>, window_params = [{transform_indices = @transform_0, window_bounds = array<i64: 64, 64>}, {pipeline_mode = #tpu.pipeline_mode<synchronous>, transform_indices = @transform_1, window_bounds = array<i64: 64, 32>}, {pipeline_mode = #tpu.pipeline_mode<synchronous>, transform_indices = @transform_2, window_bounds = array<i64: 32, 32>}, {pipeline_mode = #tpu.pipeline_mode<synchronous>, transform_indices = @transform_3, window_bounds = array<i64: 1, 32>}, {transform_indices = @transform_4, window_bounds = array<i64: 64, 32>}, {pipeline_mode = #tpu.pipeline_mode<synchronous>, transform_indices = @transform_5, window_bounds = array<i64: 32, 128>}, {pipeline_mode = #tpu.pipeline_mode<synchronous>, transform_indices = @transform_6, window_bounds = array<i64: 32, 128>}, {pipeline_mode = #tpu.pipeline_mode<synchronous>, transform_indices = @transform_7, window_bounds = array<i64: 1, 128>}, {transform_indices = @transform_8, window_bounds = array<i64: 64, 128>}]} {
    %c0 = arith.constant 0 : index
    %c0_0 = arith.constant 0 : index
    %0 = vector.load %arg2[%c0, %c0_0] : memref<64x32xf32, #tpu.memory_space<vmem>>, vector<64x32xf32>
    %c0_1 = arith.constant 0 : index
    %c0_2 = arith.constant 0 : index
    %1 = vector.load %arg3[%c0_1, %c0_2] : memref<32x32xf32, #tpu.memory_space<vmem>>, vector<32x32xf32>
    %cst = arith.constant dense<0.000000e+00> : vector<64x32xf32>
    %2 = tpu.matmul %0, %1, %cst {dimension_numbers = #tpu.dot_dimension_numbers<[1], [0], [0], [1], [0, 0, 1, 1], [], []>} : vector<64x32xf32>, vector<32x32xf32>, vector<64x32xf32> -> vector<64x32xf32>
    %c0_3 = arith.constant 0 : index
    %c0_4 = arith.constant 0 : index
    %3 = vector.load %arg1[%c0_3, %c0_4] : memref<64x64xf32, #tpu.memory_space<vmem>>, vector<64x64xf32>
    %cst_5 = arith.constant dense<0.000000e+00> : vector<64x32xf32>
    %4 = tpu.matmul %3, %2, %cst_5 {dimension_numbers = #tpu.dot_dimension_numbers<[1], [0], [0], [1], [0, 0, 1, 1], [], []>} : vector<64x64xf32>, vector<64x32xf32>, vector<64x32xf32> -> vector<64x32xf32>
    %c0_6 = arith.constant 0 : index
    %c0_7 = arith.constant 0 : index
    %5 = vector.load %arg4[%c0_6, %c0_7] : memref<1x32xf32, #tpu.memory_space<vmem>>, vector<1x32xf32>
    %6 = vector.broadcast %5 : vector<1x32xf32> to vector<64x32xf32>
    %7 = arith.addf %4, %6 : vector<64x32xf32>
    %c0_8 = arith.constant 0 : index
    %c0_9 = arith.constant 0 : index
    %8 = vector.load %arg5[%c0_8, %c0_9] : memref<64x32xf32, #tpu.memory_space<vmem>>, vector<64x32xf32>
    %c0_10 = arith.constant 0 : index
    %c0_11 = arith.constant 0 : index
    %9 = vector.load %arg6[%c0_10, %c0_11] : memref<32x128xf32, #tpu.memory_space<vmem>>, vector<32x128xf32>
    %cst_12 = arith.constant dense<0.000000e+00> : vector<64x128xf32>
    %10 = tpu.matmul %7, %9, %cst_12 {dimension_numbers = #tpu.dot_dimension_numbers<[1], [0], [0], [1], [0, 0, 1, 1], [], []>} : vector<64x32xf32>, vector<32x128xf32>, vector<64x128xf32> -> vector<64x128xf32>
    %c0_13 = arith.constant 0 : index
    %c0_14 = arith.constant 0 : index
    %11 = vector.load %arg7[%c0_13, %c0_14] : memref<32x128xf32, #tpu.memory_space<vmem>>, vector<32x128xf32>
    %cst_15 = arith.constant dense<0.000000e+00> : vector<64x128xf32>
    %12 = tpu.matmul %8, %11, %cst_15 {dimension_numbers = #tpu.dot_dimension_numbers<[1], [0], [0], [1], [0, 0, 1, 1], [], []>} : vector<64x32xf32>, vector<32x128xf32>, vector<64x128xf32> -> vector<64x128xf32>
    %13 = arith.addf %10, %12 : vector<64x128xf32>
    %14 = arith.mulf %7, %7 : vector<64x32xf32>
    %cst_16 = arith.constant dense<0.000000e+00> : vector<64xf32>
    %15 = vector.multi_reduction <add>, %14, %cst_16 [1] : vector<64x32xf32> to vector<64xf32>
    %16 = vector.shape_cast %15 : vector<64xf32> to vector<64x1xf32>
    %17 = arith.mulf %8, %8 : vector<64x32xf32>
    %cst_17 = arith.constant dense<0.000000e+00> : vector<64xf32>
    %18 = vector.multi_reduction <add>, %17, %cst_17 [1] : vector<64x32xf32> to vector<64xf32>
    %19 = vector.shape_cast %18 : vector<64xf32> to vector<64x1xf32>
    %20 = arith.addf %16, %19 : vector<64x1xf32>
    %cst_18 = arith.constant 2.000000e+00 : f32
    %21 = vector.broadcast %cst_18 : f32 to vector<64x128xf32>
    %22 = arith.mulf %21, %13 : vector<64x128xf32>
    %23 = vector.broadcast %20 : vector<64x1xf32> to vector<64x128xf32>
    %24 = arith.subf %22, %23 : vector<64x128xf32>
    %c0_19 = arith.constant 0 : index
    %c0_20 = arith.constant 0 : index
    %25 = vector.load %arg8[%c0_19, %c0_20] : memref<1x128xf32, #tpu.memory_space<vmem>>, vector<1x128xf32>
    %26 = vector.broadcast %25 : vector<1x128xf32> to vector<64x128xf32>
    %27 = arith.subf %24, %26 : vector<64x128xf32>
    %c0_21 = arith.constant 0 : index
    %c0_22 = arith.constant 0 : index
    %28 = vector.load %arg9[%c0_21, %c0_22] : memref<64x128xf32, #tpu.memory_space<vmem>>, vector<64x128xf32>
    tpu.vector_store %arg9[%c0_21, %c0_22], %27 {strides = array<i32>} : memref<64x128xf32, #tpu.memory_space<vmem>>, vector<64x128xf32>,
    return
  }
  func.func @transform_0(%arg0: i32) -> (i32, i32) {
    %c0_i32 = arith.constant 0 : i32
    %c0_i32_0 = arith.constant 0 : i32
    return %arg0, %c0_i32 : i32, i32
  }
  func.func @transform_1(%arg0: i32) -> (i32, i32) {
    %c0_i32 = arith.constant 0 : i32
    %c0_i32_0 = arith.constant 0 : i32
    %c0_i32_1 = arith.constant 0 : i32
    return %c0_i32, %c0_i32_0 : i32, i32
  }
  func.func @transform_2(%arg0: i32) -> (i32, i32) {
    %c0_i32 = arith.constant 0 : i32
    %c0_i32_0 = arith.constant 0 : i32
    %c0_i32_1 = arith.constant 0 : i32
    return %c0_i32, %c0_i32_0 : i32, i32
  }
  func.func @transform_3(%arg0: i32) -> (i32, i32) {
    %c0_i32 = arith.constant 0 : i32
    %c0_i32_0 = arith.constant 0 : i32
    %c0_i32_1 = arith.constant 0 : i32
    return %c0_i32, %c0_i32_0 : i32, i32
  }
  func.func @transform_4(%arg0: i32) -> (i32, i32) {
    %c0_i32 = arith.constant 0 : i32
    %c0_i32_0 = arith.constant 0 : i32
    return %arg0, %c0_i32 : i32, i32
  }
  func.func @transform_5(%arg0: i32) -> (i32, i32) {
    %c0_i32 = arith.constant 0 : i32
    %c0_i32_0 = arith.constant 0 : i32
    %c0_i32_1 = arith.constant 0 : i32
    return %c0_i32, %c0_i32_0 : i32, i32
  }
  func.func @transform_6(%arg0: i32) -> (i32, i32) {
    %c0_i32 = arith.constant 0 : i32
    %c0_i32_0 = arith.constant 0 : i32
    %c0_i32_1 = arith.constant 0 : i32
    return %c0_i32, %c0_i32_0 : i32, i32
  }
  func.func @transform_7(%arg0: i32) -> (i32, i32) {
    %c0_i32 = arith.constant 0 : i32
    %c0_i32_0 = arith.constant 0 : i32
    %c0_i32_1 = arith.constant 0 : i32
    return %c0_i32, %c0_i32_0 : i32, i32
  }
  func.func @transform_8(%arg0: i32) -> (i32, i32) {
    %c0_i32 = arith.constant 0 : i32
    %c0_i32_0 = arith.constant 0 : i32
    return %arg0, %c0_i32 : i32, i32
  }
}

</mosaic_0001>

<bundles_post_ra>
// kernel: gcn_proto_forward.2
= control target key start
LH: loop header
LB: loop body
LE: loop exit
PB: predicated region body
PF: predicated region fallthrough
CT: control target
= control target key end

     0   :  { %vm27_vm0 = vcmask 130048   ;;  %vm172_vm1 = vcmask 523264   ;;  %vm310_vm2 = vcmask 261120   ;;  %s556_s2 = inlined_call_operand.vmem [shape: f32[16,32], index: 2, kind: input, shape index: {}]   ;;  %s557_s1 = inlined_call_operand.vmem [shape: f32[64,16], index: 1, kind: input, shape index: {}]   ;;  %s558_s0 = inlined_call_operand.vmem [shape: f32[64,64], index: 0, kind: input, shape index: {}]   ;;  %s559_s3 = inlined_call_operand.vmem [shape: f32[1,32], index: 3, kind: input, shape index: {}]   ;;  %s560_s4 = inlined_call_operand.vmem [shape: f32[64,32], index: 4, kind: output, shape index: {}]  }
   0x1   :  { %v26_v0 = vld [vmem:[%s556_s2 + $0x8] sm:$0xff]  ;;  %v25_v1 = vld [vmem:[%s556_s2] sm:$0xff]  ;;  %v19_v4 = vld [vmem:[%s557_s1 + $0x10] sm:$0xff] }
   0x2   :  { %v17_v2 = vld [vmem:[%s557_s1] sm:$0xff]  ;;  %366 = vmatprep.subr.mxu0 %v26_v0  ;;  %v18_v3 = vld [vmem:[%s557_s1 + $0x8] sm:$0xff]  ;;  %v20_v5 = vld [vmem:[%s557_s1 + $0x18] sm:$0xff] }
   0x3   :  { %370 = vmatprep.mubr.msk.f32.mxu0 %vm27_vm0, %v17_v2  ;;  %367 = vmatpush3.msra.mxu0 %v26_v0  ;;  %v21_v6 = vld [vmem:[%s557_s1 + $0x20] sm:$0xff]  ;;  %v22_v7 = vld [vmem:[%s557_s1 + $0x28] sm:$0xff]  ;;  %v23_v8 = vld [vmem:[%s557_s1 + $0x30] sm:$0xff] }
   0x4   :  { %368 = vmatprep.subr.mxu0 %v25_v1  ;;  %v24_v9 = vld [vmem:[%s557_s1 + $0x38] sm:$0xff]  ;;  %v159_v10 = vld [vmem:[%s558_s0 + $0x10] sm:$0xff]  ;;  %v157_v11 = vld [vmem:[%s558_s0] sm:$0xff] }
   0x5   :  { %369 = vmatpush3.msra.mxu0 %v25_v1  ;;  %401 = vmatprep.mubr.msk.f32.mxu1 %vm172_vm1, %v159_v10  ;;  %v160_v20 = vld [vmem:[%s558_s0 + $0x18] sm:$0xff]  ;;  %v158_v21 = vld [vmem:[%s558_s0 + $0x8] sm:$0xff]  ;;  %v161_v22 = vld [vmem:[%s558_s0 + $0x20] sm:$0xff] }
   0x6   :  { %371 = vmatmul.mubr.msk.f32.vlgmr.msra.gmra.mxu0 %vm27_vm0, %v18_v3  ;;  %v162_v23 = vld [vmem:[%s558_s0 + $0x28] sm:$0xff]  ;;  %v163_v24 = vld [vmem:[%s558_s0 + $0x30] sm:$0xff]  ;;  %v164_v25 = vld [vmem:[%s558_s0 + $0x38] sm:$0xff] }
   0x7   :  { %373 = vmatprep.mubr.msk.f32.mxu0 %vm27_vm0, %v19_v4  ;;  %v331_v26 = vld [vmem:[%s559_s3] ss:$0 sm:$0xff] }
   0xa   :  { %374 = vmatmul.mubr.msk.f32.gmra.mxu0 %vm27_vm0, %v20_v5 }
   0xb   :  { %376 = vmatprep.mubr.msk.f32.mxu0 %vm27_vm0, %v21_v6 }
   0xe   :  { %377 = vmatmul.mubr.msk.f32.gmra.mxu0 %vm27_vm0, %v22_v7 }
   0xf   :  { %379 = vmatprep.mubr.msk.f32.mxu0 %vm27_vm0, %v23_v8 }
  0x12   :  { %380 = vmatmul.mubr.msk.f32.gmra.mxu0 %vm27_vm0, %v24_v9 }
  0x13   :  { %398 = vmatprep.mubr.msk.f32.mxu0 %vm172_vm1, %v157_v11 }
  0xc6   :  { %v372_v12 = vpop.f32.mrf.mxu0 }
  0xc8   :  { %v118_v13 = vpop.f32.mrf.mxu0 }
  0xca   :  { %v375_v14 = vpop.f32.mrf.mxu0 }
  0xcc   :  { %v128_v15 = vpop.f32.mrf.mxu0 }
  0xce   :  { %v378_v16 = vpop.f32.mrf.mxu0 }
  0xd0   :  { %v138_v17 = vpop.f32.mrf.mxu0 }
  0xd2   :  { %v381_v18 = vpop.f32.mrf.mxu0 }
  0xd3   :  { %382 = vmatprep.subr.mxu0 %v381_v18  ;;  %410 = vmatprep.subr.mxu1 %v381_v18 }
  0xd4   :  { %v148_v19 = vpop.f32.mrf.mxu0  ;;  %383 = vmatpush3.msra.mxu0 %v381_v18  ;;  %418 = vmatpush3.msra.mxu1 %v381_v18 }
  0xd5   :  { %384 = vmatprep.subr.mxu0 %v148_v19  ;;  %411 = vmatprep.subr.mxu1 %v148_v19 }
  0xd6   :  { %385 = vmatpush3.msra.mxu0 %v148_v19  ;;  %419 = vmatpush3.msra.mxu1 %v148_v19 }
  0xd7   :  { %386 = vmatprep.subr.mxu0 %v378_v16  ;;  %412 = vmatprep.subr.mxu1 %v378_v16 }
  0xd8   :  { %387 = vmatpush3.msra.mxu0 %v378_v16  ;;  %420 = vmatpush3.msra.mxu1 %v378_v16 }
  0xd9   :  { %388 = vmatprep.subr.mxu0 %v138_v17  ;;  %413 = vmatprep.subr.mxu1 %v138_v17 }
  0xda   :  { %389 = vmatpush3.msra.mxu0 %v138_v17  ;;  %421 = vmatpush3.msra.mxu1 %v138_v17 }
  0xdb   :  { %390 = vmatprep.subr.mxu0 %v375_v14  ;;  %414 = vmatprep.subr.mxu1 %v375_v14 }
  0xdc   :  { %391 = vmatpush3.msra.mxu0 %v375_v14  ;;  %422 = vmatpush3.msra.mxu1 %v375_v14 }
  0xdd   :  { %392 = vmatprep.subr.mxu0 %v128_v15  ;;  %415 = vmatprep.subr.mxu1 %v128_v15 }
  0xde   :  { %393 = vmatpush3.msra.mxu0 %v128_v15  ;;  %423 = vmatpush3.msra.mxu1 %v128_v15 }
  0xdf   :  { %394 = vmatprep.subr.mxu0 %v372_v12  ;;  %416 = vmatprep.subr.mxu1 %v372_v12 }
  0xe0   :  { %395 = vmatpush3.msra.mxu0 %v372_v12  ;;  %424 = vmatpush3.msra.mxu1 %v372_v12 }
  0xe1   :  { %396 = vmatprep.subr.mxu0 %v118_v13  ;;  %417 = vmatprep.subr.mxu1 %v118_v13 }
  0xe2   :  { %397 = vmatpush3.msra.mxu0 %v118_v13  ;;  %425 = vmatpush3.msra.mxu1 %v118_v13 }
  0xe3   :  { %402 = vmatmul.mubr.msk.f32.vlgmr.msra.gmra.mxu1 %vm172_vm1, %v160_v20  ;;  %399 = vmatmul.mubr.msk.f32.vlgmr.msra.gmra.mxu0 %vm172_vm1, %v158_v21 }
  0xe4   :  { %404 = vmatprep.mubr.msk.f32.mxu1 %vm172_vm1, %v161_v22 }
  0xe7   :  { %405 = vmatmul.mubr.msk.f32.gmra.mxu1 %vm172_vm1, %v162_v23 }
  0xe8   :  { %407 = vmatprep.mubr.msk.f32.mxu1 %vm172_vm1, %v163_v24 }
  0xeb   :  { %408 = vmatmul.mubr.msk.f32.gmra.mxu1 %vm172_vm1, %v164_v25 }
 0x1a3   :  { %v403_v27 = vpop.f32.mrf.mxu1  ;;  %v400_v28 = vpop.f32.mrf.mxu0 }
 0x1a4   :  { %v279_v29 = vadd.f32 %v403_v27, %v331_v26  ;;  %v269_v30 = vadd.f32 %v400_v28, %v331_v26 }
 0x1a5   :  { %v273_v31 = vpop.f32.mrf.mxu1  ;;  %v263_v32 = vpop.f32.mrf.mxu0 }
 0x1a6   :  { %v305_v33 = vmax.f32 %v279_v29, 0.0  ;;  %v274_v34 = vadd.f32 %v331_v26, %v273_v31  ;;  %v303_v35 = vmax.f32 %v269_v30, 0.0  ;;  %v264_v36 = vadd.f32 %v331_v26, %v263_v32 }
 0x1a7   :  { %v406_v37 = vpop.f32.mrf.mxu1 }
 0x1a8   :  { %314 = vst.msk [vmem:[%s560_s4 + $0x18] sm:$0xff] %vm310_vm2, %v305_v33  ;;  %v304_v38 = vmax.f32 %v274_v34, 0.0  ;;  %v289_v39 = vadd.f32 %v406_v37, %v331_v26  ;;  %312 = vst.msk [vmem:[%s560_s4 + $0x8] sm:$0xff] %vm310_vm2, %v303_v35  ;;  %v302_v40 = vmax.f32 %v264_v36, 0.0 }
 0x1a9   :  { %v283_v41 = vpop.f32.mrf.mxu1 }
 0x1aa   :  { %313 = vst.msk [vmem:[%s560_s4 + $0x10] sm:$0xff] %vm310_vm2, %v304_v38  ;;  %v307_v42 = vmax.f32 %v289_v39, 0.0  ;;  %v284_v43 = vadd.f32 %v331_v26, %v283_v41  ;;  %311 = vst.msk [vmem:[%s560_s4] sm:$0xff] %vm310_vm2, %v302_v40 }
 0x1ab   :  { %v409_v44 = vpop.f32.mrf.mxu1 }
 0x1ac   :  { %316 = vst.msk [vmem:[%s560_s4 + $0x28] sm:$0xff] %vm310_vm2, %v307_v42  ;;  %v306_v45 = vmax.f32 %v284_v43, 0.0  ;;  %v299_v46 = vadd.f32 %v409_v44, %v331_v26 }
 0x1ad   :  { %v293_v47 = vpop.f32.mrf.mxu1 }
 0x1ae   :  { %315 = vst.msk [vmem:[%s560_s4 + $0x20] sm:$0xff] %vm310_vm2, %v306_v45  ;;  %v309_v48 = vmax.f32 %v299_v46, 0.0  ;;  %v294_v49 = vadd.f32 %v331_v26, %v293_v47 }
 0x1b0   :  { %318 = vst.msk [vmem:[%s560_s4 + $0x38] sm:$0xff] %vm310_vm2, %v309_v48  ;;  %v308_v50 = vmax.f32 %v294_v49, 0.0 }
 0x1b2   :  { %317 = vst.msk [vmem:[%s560_s4 + $0x30] sm:$0xff] %vm310_vm2, %v308_v50 }

// kernel: gcn_proto_forward.3
= control target key start
LH: loop header
LB: loop body
LE: loop exit
PB: predicated region body
PF: predicated region fallthrough
CT: control target
= control target key end

     0   :  { %vm41_vm0 = vcmask 261120   ;;  %vm186_vm1 = vcmask 523264   ;;  %s1128_s2 = inlined_call_operand.vmem [shape: f32[32,32], index: 2, kind: input, shape index: {}]   ;;  %s1129_s1 = inlined_call_operand.vmem [shape: f32[64,32], index: 1, kind: input, shape index: {}]   ;;  %s1130_s0 = inlined_call_operand.vmem [shape: f32[64,64], index: 0, kind: input, shape index: {}]   ;;  %s1131_s6 = inlined_call_operand.vmem [shape: f32[32,128], index: 6, kind: input, shape index: {}]   ;;  %s1132_s4 = inlined_call_operand.vmem [shape: f32[64,32], index: 4, kind: input, shape index: {}]   ;;  %s1133_s5 = inlined_call_operand.vmem [shape: f32[32,128], index: 5, kind: input, shape index: {}]   ;;  %s1134_s3 = inlined_call_operand.vmem [shape: f32[1,32], index: 3, kind: input, shape index: {}]   ;;  %s1135_s7 = inlined_call_operand.vmem [shape: f32[1,128], index: 7, kind: input, shape index: {}]   ;;  %s1136_s8 = inlined_call_operand.vmem [shape: f32[64,128], index: 8, kind: output, shape index: {}]  }
   0x1   :  { %v40_v0 = vld [vmem:[%s1128_s2 + $0x18] sm:$0xff]  ;;  %v39_v1 = vld [vmem:[%s1128_s2 + $0x10] sm:$0xff]  ;;  %v29_v2 = vld [vmem:[%s1129_s1] sm:$0xff] }
   0x2   :  { %791 = vmatprep.subr.mxu0 %v40_v0  ;;  %v38_v3 = vld [vmem:[%s1128_s2 + $0x8] sm:$0xff]  ;;  %799 = vmatprep.mubr.msk.f32.mxu0 %vm41_vm0, %v29_v2  ;;  %v37_v4 = vld [vmem:[%s1128_s2] sm:$0xff]  ;;  %v31_v6 = vld [vmem:[%s1129_s1 + $0x10] sm:$0xff] }
   0x3   :  { %792 = vmatpush3.msra.mxu0 %v40_v0  ;;  %v30_v5 = vld [vmem:[%s1129_s1 + $0x8] sm:$0xff]  ;;  %v32_v7 = vld [vmem:[%s1129_s1 + $0x18] sm:$0xff]  ;;  %v33_v8 = vld [vmem:[%s1129_s1 + $0x20] sm:$0xff] }
   0x4   :  { %793 = vmatprep.subr.mxu0 %v39_v1  ;;  %v34_v9 = vld [vmem:[%s1129_s1 + $0x28] sm:$0xff]  ;;  %v35_v10 = vld [vmem:[%s1129_s1 + $0x30] sm:$0xff]  ;;  %v36_v11 = vld [vmem:[%s1129_s1 + $0x38] sm:$0xff] }
   0x5   :  { %794 = vmatpush3.msra.mxu0 %v39_v1  ;;  %v171_v12 = vld [vmem:[%s1130_s0] sm:$0xff]  ;;  %v331_v13 = vld [vmem:[%s1131_s6 + $0x18] sm:$0xff]  ;;  %v330_v14 = vld [vmem:[%s1131_s6 + $0x10] sm:$0xff] }
   0x6   :  { %795 = vmatprep.subr.mxu0 %v38_v3  ;;  %827 = vmatprep.mubr.msk.f32.mxu1 %vm186_vm1, %v171_v12  ;;  %v316_v15 = vld [vmem:[%s1132_s4] sm:$0xff]  ;;  %v317_v16 = vld [vmem:[%s1132_s4 + $0x8] sm:$0xff]  ;;  %v318_v18 = vld [vmem:[%s1132_s4 + $0x10] sm:$0xff] }
   0x7   :  { %796 = vmatpush3.msra.mxu0 %v38_v3  ;;  %v329_v17 = vld [vmem:[%s1131_s6 + $0x8] sm:$0xff]  ;;  %v622_v19 = vmul.f32 %v316_v15, %v316_v15  ;;  %v623_v20 = vmul.f32 %v317_v16, %v317_v16  ;;  %v624_v21 = vmul.f32 %v318_v18, %v318_v18  ;;  %v328_v22 = vld [vmem:[%s1131_s6] sm:$0xff]  ;;  %v327_v26 = vld [vmem:[%s1133_s5 + $0x18] sm:$0xff] }
   0x8   :  { %797 = vmatprep.subr.mxu0 %v37_v4  ;;  %v326_v27 = vld [vmem:[%s1133_s5 + $0x10] sm:$0xff]  ;;  %v319_v28 = vld [vmem:[%s1132_s4 + $0x18] sm:$0xff]  ;;  %v320_v29 = vld [vmem:[%s1132_s4 + $0x20] sm:$0xff] }
   0x9   :  { %798 = vmatpush3.msra.mxu0 %v37_v4  ;;  %v630_v23 = vsel %vm41_vm0, %v622_v19, 0.0  ;;  %v633_v24 = vsel %vm41_vm0, %v623_v20, 0.0  ;;  %v636_v25 = vsel %vm41_vm0, %v624_v21, 0.0  ;;  %v321_v30 = vld [vmem:[%s1132_s4 + $0x28] sm:$0xff]  ;;  %v173_v40 = vld [vmem:[%s1130_s0 + $0x10] sm:$0xff]  ;;  %v174_v41 = vld [vmem:[%s1130_s0 + $0x18] sm:$0xff]  ;;  %v625_v46 = vmul.f32 %v319_v28, %v319_v28 }
   0xa   :  { %800 = vmatmul.mubr.msk.f32.vlgmr.msra.gmra.mxu0 %vm41_vm0, %v30_v5  ;;  %839 = vmatprep.subr.mxu0 %v331_v13  ;;  %v172_v39 = vld [vmem:[%s1130_s0 + $0x8] sm:$0xff]  ;;  %v175_v42 = vld [vmem:[%s1130_s0 + $0x20] sm:$0xff]  ;;  %v177_v44 = vld [vmem:[%s1130_s0 + $0x30] sm:$0xff]  ;;  %v626_v47 = vmul.f32 %v320_v29, %v320_v29  ;;  %v627_v54 = vmul.f32 %v321_v30, %v321_v30 }
   0xb   :  { %802 = vmatprep.mubr.msk.f32.mxu0 %vm41_vm0, %v31_v6  ;;  %840 = vmatpush3.msra.mxu0 %v331_v13  ;;  %v176_v43 = vld [vmem:[%s1130_s0 + $0x28] sm:$0xff]  ;;  %v178_v45 = vld [vmem:[%s1130_s0 + $0x38] sm:$0xff]  ;;  %v1056_v48 = vld [vmem:[%s1132_s4 + $0x30] sm:$0xff]  ;;  %v639_v50 = vsel %vm41_vm0, %v625_v46, 0.0 }
   0xc   :  { %841 = vmatprep.subr.mxu0 %v330_v14  ;;  %631 = vadd.xlane.f32.xlu0 %v630_v23  ;;  %v325_v49 = vld [vmem:[%s1133_s5 + $0x8] sm:$0xff]  ;;  %v642_v51 = vsel %vm41_vm0, %v626_v47, 0.0  ;;  %v1068_v52 = vld [vmem:[%s1132_s4 + $0x38] sm:$0xff]  ;;  %v324_v53 = vld [vmem:[%s1133_s5] sm:$0xff]  ;;  %v645_v55 = vsel %vm41_vm0, %v627_v54, 0.0  ;;  %v628_v23 = vmul.f32 %v1056_v48, %v1056_v48 }
   0xd   :  { %842 = vmatpush3.msra.mxu0 %v330_v14  ;;  %634 = vadd.xlane.f32.xlu1 %v633_v24  ;;  %v713_v56 = vld [vmem:[%s1134_s3] ss:$0 sm:$0xff] }
   0xe   :  { %803 = vmatmul.mubr.msk.f32.gmra.mxu0 %vm41_vm0, %v32_v7  ;;  %843 = vmatprep.subr.mxu0 %v329_v17 }
   0xf   :  { %805 = vmatprep.mubr.msk.f32.mxu0 %vm41_vm0, %v33_v8  ;;  %844 = vmatpush3.msra.mxu0 %v329_v17 }
  0x10   :  { %845 = vmatprep.subr.mxu0 %v328_v22  ;;  %637 = vadd.xlane.f32.xlu0 %v636_v25  ;;  %v629_v25 = vmul.f32 %v1068_v52, %v1068_v52 }
  0x11   :  { %846 = vmatpush3.msra.mxu0 %v328_v22  ;;  %640 = vadd.xlane.f32.xlu1 %v639_v50 }
  0x12   :  { %806 = vmatmul.mubr.msk.f32.gmra.mxu0 %vm41_vm0, %v34_v9  ;;  %859 = vmatprep.subr.mxu0 %v327_v26 }
  0x13   :  { %808 = vmatprep.mubr.msk.f32.mxu0 %vm41_vm0, %v35_v10 }
  0x14   :  { %643 = vadd.xlane.f32.xlu0 %v642_v51 }
  0x15   :  { %646 = vadd.xlane.f32.xlu1 %v645_v55  ;;  %v738_v55 = vld [vmem:[%s1135_s7] ss:$0 sm:$0xff] }
  0x16   :  { %809 = vmatmul.mubr.msk.f32.gmra.mxu0 %vm41_vm0, %v36_v11 }
  0x17   :  { %847 = vmatprep.mubr.msk.f32.mxu0 %vm41_vm0, %v316_v15 }
  0x1a   :  { %848 = vmatmul.mubr.msk.f32.vlgmr.msra.gmra.mxu0 %vm41_vm0, %v317_v16 }
  0x1b   :  { %850 = vmatprep.mubr.msk.f32.mxu0 %vm41_vm0, %v318_v18  ;;  %860 = vmatpush3.msra.mxu0 %v327_v26 }
  0x1c   :  { %861 = vmatprep.subr.mxu0 %v326_v27 }
  0x1d   :  { %862 = vmatpush3.msra.mxu0 %v326_v27 }
  0x1e   :  { %851 = vmatmul.mubr.msk.f32.gmra.mxu0 %vm41_vm0, %v319_v28  ;;  %863 = vmatprep.subr.mxu0 %v325_v49  ;;  %v651_v28 = vsel %vm41_vm0, %v629_v25, 0.0 }
  0x1f   :  { %853 = vmatprep.mubr.msk.f32.mxu0 %vm41_vm0, %v320_v29  ;;  %864 = vmatpush3.msra.mxu0 %v325_v49 }
  0x20   :  { %865 = vmatprep.subr.mxu0 %v324_v53 }
  0x21   :  { %866 = vmatpush3.msra.mxu0 %v324_v53 }
  0x22   :  { %854 = vmatmul.mubr.msk.f32.gmra.mxu0 %vm41_vm0, %v321_v30 }
  0x23   :  { %856 = vmatprep.mubr.msk.f32.mxu0 %vm41_vm0, %v1056_v48 }
  0x26   :  { %857 = vmatmul.mubr.msk.f32.gmra.mxu0 %vm41_vm0, %v1068_v52 }
  0x96   :  { %v635_v30 = vpop.xlane.xlu1 %634 }
  0xca   :  { %v801_v31 = vpop.f32.mrf.mxu0 }
  0xcc   :  { %v132_v32 = vpop.f32.mrf.mxu0 }
  0xce   :  { %v804_v33 = vpop.f32.mrf.mxu0 }
  0xd0   :  { %v142_v34 = vpop.f32.mrf.mxu0 }
  0xd2   :  { %v807_v35 = vpop.f32.mrf.mxu0 }
  0xd4   :  { %v152_v36 = vpop.f32.mrf.mxu0 }
  0xd6   :  { %v810_v37 = vpop.f32.mrf.mxu0 }
  0xd7   :  { %811 = vmatprep.subr.mxu1 %v810_v37 }
  0xd8   :  { %v162_v38 = vpop.f32.mrf.mxu0  ;;  %812 = vmatpush3.msra.mxu1 %v810_v37 }
  0xd9   :  { %813 = vmatprep.subr.mxu1 %v162_v38 }
  0xda   :  { %814 = vmatpush3.msra.mxu1 %v162_v38  ;;  %v849_v29 = vpop.f32.mrf.mxu0 }
  0xdb   :  { %815 = vmatprep.subr.mxu1 %v807_v35 }
  0xdc   :  { %816 = vmatpush3.msra.mxu1 %v807_v35 }
  0xdd   :  { %817 = vmatprep.subr.mxu1 %v152_v36 }
  0xde   :  { %818 = vmatpush3.msra.mxu1 %v152_v36 }
  0xdf   :  { %819 = vmatprep.subr.mxu1 %v804_v33 }
  0xe0   :  { %820 = vmatpush3.msra.mxu1 %v804_v33  ;;  %v641_v33 = vpop.xlane.xlu1 %640 }
  0xe1   :  { %821 = vmatprep.subr.mxu1 %v142_v34 }
  0xe2   :  { %822 = vmatpush3.msra.mxu1 %v142_v34 }
  0xe3   :  { %823 = vmatprep.subr.mxu1 %v801_v31 }
  0xe4   :  { %824 = vmatpush3.msra.mxu1 %v801_v31  ;;  %v422_v31 = vpop.f32.mrf.mxu0  ;;  %v647_v37 = vpop.xlane.xlu1 %646 }
  0xe5   :  { %825 = vmatprep.subr.mxu1 %v132_v32 }
  0xe6   :  { %826 = vmatpush3.msra.mxu1 %v132_v32  ;;  %v632_v32 = vpop.xlane.xlu0 %631  ;;  %v852_v34 = vpop.f32.mrf.mxu0 }
  0xe7   :  { %828 = vmatmul.mubr.msk.f32.vlgmr.msra.gmra.mxu1 %vm186_vm1, %v172_v39  ;;  %879 = vmatprep.subr.mxu1 %v327_v26 }
  0xe8   :  { %830 = vmatprep.mubr.msk.f32.mxu1 %vm186_vm1, %v173_v40  ;;  %883 = vmatpush3.msra.mxu1 %v327_v26  ;;  %v432_v36 = vpop.f32.mrf.mxu0 }
  0xe9   :  { %880 = vmatprep.subr.mxu1 %v326_v27 }
  0xea   :  { %884 = vmatpush3.msra.mxu1 %v326_v27  ;;  %v648_v27 = vsel %vm41_vm0, %v628_v23, 0.0  ;;  %v638_v35 = vpop.xlane.xlu0 %637  ;;  %v855_v38 = vpop.f32.mrf.mxu0 }
  0xeb   :  { %831 = vmatmul.mubr.msk.f32.gmra.mxu1 %vm186_vm1, %v174_v41  ;;  %881 = vmatprep.subr.mxu1 %v325_v49 }
  0xec   :  { %833 = vmatprep.mubr.msk.f32.mxu1 %vm186_vm1, %v175_v42  ;;  %885 = vmatpush3.msra.mxu1 %v325_v49  ;;  %v442_v41 = vpop.f32.mrf.mxu0 }
  0xed   :  { %882 = vmatprep.subr.mxu1 %v324_v53 }
  0xee   :  { %886 = vmatpush3.msra.mxu1 %v324_v53  ;;  %v644_v39 = vpop.xlane.xlu0 %643 }
  0xef   :  { %834 = vmatmul.mubr.msk.f32.gmra.mxu1 %vm186_vm1, %v176_v43  ;;  %v858_v43 = vpop.f32.mrf.mxu0 }
  0xf0   :  { %836 = vmatprep.mubr.msk.f32.mxu1 %vm186_vm1, %v177_v44 }
  0xf3   :  { %837 = vmatmul.mubr.msk.f32.gmra.mxu1 %vm186_vm1, %v178_v45  ;;  %v452_v45 = vpop.f32.mrf.mxu0 }
 0x1a7   :  { %v829_v57 = vpop.f32.mrf.mxu1 }
 0x1a8   :  { %v283_v58 = vadd.f32 %v829_v57, %v713_v56 }
 0x1a9   :  { %v277_v59 = vpop.f32.mrf.mxu1 }
 0x1aa   :  { %v278_v60 = vadd.f32 %v713_v56, %v277_v59  ;;  %v591_v61 = vmul.f32 %v283_v58, %v283_v58 }
 0x1ab   :  { %v832_v62 = vpop.f32.mrf.mxu1 }
 0x1ac   :  { %v293_v63 = vadd.f32 %v832_v62, %v713_v56  ;;  %867 = vmatprep.mubr.msk.f32.mxu0 %vm41_vm0, %v278_v60  ;;  %v601_v0 = vsel %vm41_vm0, %v591_v61, 0.0  ;;  %v590_v2 = vmul.f32 %v278_v60, %v278_v60 }
 0x1ad   :  { %602 = vadd.xlane.f32.xlu0 %v601_v0  ;;  %v287_v1 = vpop.f32.mrf.mxu1  ;;  %868 = vmatmul.mubr.msk.f32.vlgmr.msra.gmra.mxu0 %vm41_vm0, %v283_v58 }
 0x1ae   :  { %v288_v3 = vadd.f32 %v713_v56, %v287_v1  ;;  %v593_v4 = vmul.f32 %v293_v63, %v293_v63  ;;  %v598_v10 = vsel %vm41_vm0, %v590_v2, 0.0 }
 0x1af   :  { %v835_v5 = vpop.f32.mrf.mxu1 }
 0x1b0   :  { %v303_v6 = vadd.f32 %v835_v5, %v713_v56  ;;  %870 = vmatprep.mubr.msk.f32.mxu1 %vm41_vm0, %v288_v3  ;;  %v607_v7 = vsel %vm41_vm0, %v593_v4, 0.0  ;;  %v592_v8 = vmul.f32 %v288_v3, %v288_v3 }
 0x1b1   :  { %608 = vadd.xlane.f32.xlu1 %v607_v7  ;;  %v297_v9 = vpop.f32.mrf.mxu1  ;;  %871 = vmatmul.mubr.msk.f32.vlgmr.msra.gmra.mxu1 %vm41_vm0, %v293_v63 }
 0x1b2   :  { %v298_v11 = vadd.f32 %v713_v56, %v297_v9  ;;  %599 = vadd.xlane.f32.xlu0 %v598_v10  ;;  %v604_v14 = vsel %vm41_vm0, %v592_v8, 0.0  ;;  %v595_v16 = vmul.f32 %v303_v6, %v303_v6 }
 0x1b3   :  { %v838_v12 = vpop.f32.mrf.mxu1 }
 0x1b4   :  { %v313_v13 = vadd.f32 %v838_v12, %v713_v56  ;;  %873 = vmatprep.mubr.msk.f32.mxu1 %vm41_vm0, %v298_v11  ;;  %v594_v15 = vmul.f32 %v298_v11, %v298_v11  ;;  %v613_v20 = vsel %vm41_vm0, %v595_v16, 0.0 }
 0x1b5   :  { %v307_v17 = vpop.f32.mrf.mxu1  ;;  %605 = vadd.xlane.f32.xlu1 %v604_v14  ;;  %874 = vmatmul.mubr.msk.f32.gmra.mxu1 %vm41_vm0, %v303_v6 }
 0x1b6   :  { %v308_v18 = vadd.f32 %v713_v56, %v307_v17  ;;  %v610_v19 = vsel %vm41_vm0, %v594_v15, 0.0  ;;  %v597_v22 = vmul.f32 %v313_v13, %v313_v13 }
 0x1b7   :  { %611 = vadd.xlane.f32.xlu0 %v610_v19 }
 0x1b8   :  { %876 = vmatprep.mubr.msk.f32.mxu1 %vm41_vm0, %v308_v18  ;;  %v596_v21 = vmul.f32 %v308_v18, %v308_v18  ;;  %v619_v26 = vsel %vm41_vm0, %v597_v22, 0.0 }
 0x1b9   :  { %614 = vadd.xlane.f32.xlu1 %v613_v20  ;;  %877 = vmatmul.mubr.msk.f32.gmra.mxu1 %vm41_vm0, %v313_v13 }
 0x1ba   :  { %v616_v24 = vsel %vm41_vm0, %v596_v21, 0.0 }
 0x1bb   :  { %617 = vadd.xlane.f32.xlu0 %v616_v24 }
 0x1bd   :  { %620 = vadd.xlane.f32.xlu1 %v619_v26 }
 0x1bf   :  { %649 = vadd.xlane.f32.xlu0 %v648_v27 }
 0x1c1   :  { %652 = vadd.xlane.f32.xlu1 %v651_v28 }
 0x236   :  { %v603_v42 = vpop.xlane.xlu0 %602 }
 0x237   :  { %v655_v52 = vadd.f32 %v635_v30, %v603_v42 }
 0x23a   :  { %v609_v40 = vpop.xlane.xlu1 %608 }
 0x23b   :  { %v600_v46 = vpop.xlane.xlu0 %599  ;;  %v657_v62 = vadd.f32 %v641_v33, %v609_v40 }
 0x23c   :  { %v654_v57 = vadd.f32 %v632_v32, %v600_v46 }
 0x23e   :  { %v606_v44 = vpop.xlane.xlu1 %605 }
 0x23f   :  { %v656_v4 = vadd.f32 %v638_v35, %v606_v44 }
 0x240   :  { %v612_v50 = vpop.xlane.xlu0 %611 }
 0x241   :  { %v658_v18 = vadd.f32 %v644_v39, %v612_v50 }
 0x242   :  { %v615_v47 = vpop.xlane.xlu1 %614 }
 0x243   :  { %v659_v11 = vadd.f32 %v647_v37, %v615_v47 }
 0x244   :  { %v618_v5 = vpop.xlane.xlu0 %617 }
 0x246   :  { %v621_v58 = vpop.xlane.xlu1 %620 }
 0x248   :  { %v650_v24 = vpop.xlane.xlu0 %649 }
 0x24a   :  { %v653_v13 = vpop.xlane.xlu1 %652 }
 0x24b   :  { %v661_v25 = vadd.f32 %v653_v13, %v621_v58 }
 0x26d   :  { %v869_v48 = vpop.f32.mrf.mxu0 }
 0x26e   :  { %v557_v49 = vadd.f32 %v869_v48, %v849_v29 }
 0x26f   :  { %v551_v51 = vpop.f32.mrf.mxu0 }
 0x270   :  { %v663_v53 = vmul.f32 2.0, %v557_v49  ;;  %v552_v54 = vadd.f32 %v551_v51, %v422_v31  ;;  %v660_v31 = vadd.f32 %v650_v24, %v618_v5 }
 0x271   :  { %v872_v56 = vpop.f32.mrf.mxu1 }
 0x272   :  { %v671_v59 = vsub.f32 %v663_v53, %v655_v52  ;;  %v662_v60 = vmul.f32 2.0, %v552_v54  ;;  %v567_v61 = vadd.f32 %v872_v56, %v852_v34 }
 0x273   :  { %v561_v63 = vpop.f32.mrf.mxu1 }
 0x274   :  { %v686_v0 = vsub.f32 %v671_v59, %v738_v55  ;;  %v670_v1 = vsub.f32 %v662_v60, %v654_v57  ;;  %v665_v2 = vmul.f32 2.0, %v567_v61  ;;  %v562_v3 = vadd.f32 %v561_v63, %v432_v36 }
 0x275   :  { %v875_v6 = vpop.f32.mrf.mxu1 }
 0x276   :  { %694 = vst [vmem:[%s1136_s8 + $0x8] sm:$0xff] %v686_v0  ;;  %v685_v7 = vsub.f32 %v670_v1, %v738_v55  ;;  %v673_v8 = vsub.f32 %v665_v2, %v657_v62  ;;  %v664_v9 = vmul.f32 2.0, %v562_v3  ;;  %v577_v10 = vadd.f32 %v875_v6, %v855_v38 }
 0x277   :  { %v571_v12 = vpop.f32.mrf.mxu1 }
 0x278   :  { %693 = vst [vmem:[%s1136_s8] sm:$0xff] %v685_v7  ;;  %v688_v14 = vsub.f32 %v673_v8, %v738_v55  ;;  %v672_v15 = vsub.f32 %v664_v9, %v656_v4  ;;  %v667_v16 = vmul.f32 2.0, %v577_v10  ;;  %v572_v17 = vadd.f32 %v571_v12, %v442_v41 }
 0x279   :  { %v878_v19 = vpop.f32.mrf.mxu1 }
 0x27a   :  { %696 = vst [vmem:[%s1136_s8 + $0x18] sm:$0xff] %v688_v14  ;;  %v687_v20 = vsub.f32 %v672_v15, %v738_v55  ;;  %v675_v21 = vsub.f32 %v667_v16, %v659_v11  ;;  %v666_v22 = vmul.f32 2.0, %v572_v17  ;;  %v587_v23 = vadd.f32 %v878_v19, %v858_v43 }
 0x27b   :  { %v581_v26 = vpop.f32.mrf.mxu1 }
 0x27c   :  { %695 = vst [vmem:[%s1136_s8 + $0x10] sm:$0xff] %v687_v20  ;;  %v690_v27 = vsub.f32 %v675_v21, %v738_v55  ;;  %v674_v28 = vsub.f32 %v666_v22, %v658_v18  ;;  %v669_v29 = vmul.f32 2.0, %v587_v23  ;;  %v582_v30 = vadd.f32 %v581_v26, %v452_v45 }
 0x27e   :  { %698 = vst [vmem:[%s1136_s8 + $0x28] sm:$0xff] %v690_v27  ;;  %v689_v32 = vsub.f32 %v674_v28, %v738_v55  ;;  %v677_v33 = vsub.f32 %v669_v29, %v661_v25  ;;  %v668_v34 = vmul.f32 2.0, %v582_v30 }
 0x280   :  { %697 = vst [vmem:[%s1136_s8 + $0x20] sm:$0xff] %v689_v32  ;;  %v692_v35 = vsub.f32 %v677_v33, %v738_v55  ;;  %v676_v36 = vsub.f32 %v668_v34, %v660_v31 }
 0x282   :  { %700 = vst [vmem:[%s1136_s8 + $0x38] sm:$0xff] %v692_v35  ;;  %v691_v37 = vsub.f32 %v676_v36, %v738_v55 }
 0x284   :  { %699 = vst [vmem:[%s1136_s8 + $0x30] sm:$0xff] %v691_v37 }

</bundles_post_ra>
